<compile_context>
chip_gen: v5e
topology: v5e:2x2
jax: 0.10.0
libtpu: 0.0.40
codegen_flags: <defaults>
</compile_context>

<pallas_src>
import functools

import jax
import jax.numpy as jnp
from jax.experimental import pallas as pl
from jax.experimental.pallas import tpu as pltpu

EPS = 1e-5


def _prenorm_linear_kernel(x_ref, w_ref, b_ref, o_ref):
    # x_ref: (TM, D) tile of flattened tokens. LayerNorm over the last axis
    # (two-pass mean/var, f32), then out = x_hat @ W' + b' with W' in bf16.
    x = x_ref[...].astype(jnp.float32)
    mean = jnp.mean(x, axis=-1, keepdims=True)
    centered = x - mean
    var = jnp.mean(centered * centered, axis=-1, keepdims=True)
    x_hat = centered * jax.lax.rsqrt(var + EPS)
    out = jnp.dot(
        x_hat.astype(w_ref.dtype), w_ref[...],
        preferred_element_type=jnp.float32,
    ) + b_ref[...]
    o_ref[...] = out.astype(o_ref.dtype)


@functools.partial(jax.jit, static_argnames=("tm", "matmul_dtype"))
def prenorm_linear(x, gamma, beta, w, b, *, tm=512, matmul_dtype=jnp.bfloat16):
    """x: (B, N, D). Returns fn(LayerNorm(x)) with fn = Linear(D, D)."""
    B, N, D = x.shape
    M = B * N
    x2 = x.reshape(M, D)

    # Fold LayerNorm affine into the Linear (done once, outside the kernel):
    #   (x_hat * gamma + beta) @ W + b == x_hat @ (gamma[:, None] * W) + (beta @ W + b)
    w_folded = (gamma[:, None] * w).astype(matmul_dtype)          # (D, D), bf16
    b_folded = (beta @ w + b).reshape(1, D).astype(jnp.float32)   # (1, D), f32

    # Row-tile size: multiple of 8 (f32 sublane) or the full M.
    tm = min(tm, M)
    if tm != M and tm % 8 != 0:
        tm = max(8, (tm // 8) * 8)
    grid = (pl.cdiv(M, tm),)

    out = pl.pallas_call(
        _prenorm_linear_kernel,
        out_shape=jax.ShapeDtypeStruct((M, D), x.dtype),
        grid_spec=pltpu.PrefetchScalarGridSpec(
            num_scalar_prefetch=0,
            grid=grid,
            in_specs=[
                pl.BlockSpec((tm, D), lambda i: (i, 0)),  # x tile (pipelined)
                pl.BlockSpec((D, D), lambda i: (0, 0)),   # folded W (resident)
                pl.BlockSpec((1, D), lambda i: (0, 0)),   # folded bias (resident)
            ],
            out_specs=pl.BlockSpec((tm, D), lambda i: (i, 0)),
        ),
        compiler_params=pltpu.CompilerParams(
            # Token tiles are fully independent -> shard across TCs on v7x.
            dimension_semantics=("parallel",),
        ),
    )(x2, w_folded, b_folded)
    return out.reshape(B, N, D)


def _reference_f32(x, gamma, beta, w, b):
    """Pure-f32 LayerNorm + Linear (matches PyTorch PreNorm forward)."""
    mean = jnp.mean(x, axis=-1, keepdims=True)
    var = jnp.mean((x - mean) ** 2, axis=-1, keepdims=True)
    x_hat = (x - mean) / jnp.sqrt(var + EPS)
    y = x_hat * gamma + beta
    return jnp.einsum("bnd,de->bne", y, w) + b


def _reference_quantized(x, gamma, beta, w, b, matmul_dtype):
    """Reference with the same bf16 quantization of the matmul operands."""
    mean = jnp.mean(x, axis=-1, keepdims=True)
    var = jnp.mean((x - mean) ** 2, axis=-1, keepdims=True)
    x_hat = (x - mean) / jnp.sqrt(var + EPS)
    w_f = (gamma[:, None] * w).astype(matmul_dtype).astype(jnp.float32)
    b_f = beta @ w + b
    xq = x_hat.astype(matmul_dtype).astype(jnp.float32)
    return jnp.einsum("bnd,de->bne", xq, w_f,
                      preferred_element_type=jnp.float32) + b_f


if __name__ == "__main__":
    key = jax.random.PRNGKey(0)
    B, N, D = 2, 8, 32  # small demo shapes (seq=8, hidden=32)

    k_x, k_w, k_b = jax.random.split(key, 3)
    x = jax.random.normal(k_x, (B, N, D), dtype=jnp.float32)

    # LayerNorm params: PyTorch default init (weight=1, bias=0)
    gamma = jnp.ones((D,), dtype=jnp.float32)
    beta = jnp.zeros((D,), dtype=jnp.float32)

    # fn = Linear(D, D) params, deterministic init
    w = jax.random.normal(k_w, (D, D), dtype=jnp.float32) * (1.0 / jnp.sqrt(D))
    b = jax.random.normal(k_b, (D,), dtype=jnp.float32) * 0.01

    out = prenorm_linear(x, gamma, beta, w, b)
    out = jax.block_until_ready(out)
    assert out.shape == (B, N, D)

    # Tight check against a reference with identical bf16 operand quantization.
    ref_q = _reference_quantized(x, gamma, beta, w, b, jnp.bfloat16)
    assert jnp.allclose(out, ref_q, atol=1e-3, rtol=1e-3), "mismatch vs quantized ref"

    # Loose check against the exact f32 PyTorch-equivalent forward.
    ref = _reference_f32(x, gamma, beta, w, b)
    assert jnp.allclose(out, ref, atol=5e-2, rtol=5e-2), "mismatch vs f32 ref"

    print("KERNEL_OK")
</pallas_src>

<mosaic_0001>
module attributes {stable_mosaic.version = 11 : i64} {
  func.func @_prenorm_linear_kernel(%arg0: i32, %arg1: memref<16x32xf32, #tpu.memory_space<vmem>>, %arg2: memref<32x32xbf16, #tpu.memory_space<vmem>>, %arg3: memref<1x32xf32, #tpu.memory_space<vmem>>, %arg4: memref<16x32xf32, #tpu.memory_space<vmem>>) attributes {dimension_semantics = [#tpu.dimension_semantics<parallel>], iteration_bounds = array<i64: 1>, scalar_prefetch = 0 : i64, scratch_operands = 0 : i64, tpu.core_type = #tpu.core_type<tc>, window_params = [{transform_indices = @transform_0, window_bounds = array<i64: 16, 32>}, {pipeline_mode = #tpu.pipeline_mode<synchronous>, transform_indices = @transform_1, window_bounds = array<i64: 32, 32>}, {pipeline_mode = #tpu.pipeline_mode<synchronous>, transform_indices = @transform_2, window_bounds = array<i64: 1, 32>}, {transform_indices = @transform_3, window_bounds = array<i64: 16, 32>}]} {
    %c0 = arith.constant 0 : index
    %c0_0 = arith.constant 0 : index
    %0 = vector.load %arg1[%c0, %c0_0] : memref<16x32xf32, #tpu.memory_space<vmem>>, vector<16x32xf32>
    %cst = arith.constant dense<0.000000e+00> : vector<16xf32>
    %1 = vector.multi_reduction <add>, %0, %cst [1] : vector<16x32xf32> to vector<16xf32>
    %2 = vector.shape_cast %1 : vector<16xf32> to vector<16x1xf32>
    %cst_1 = arith.constant 3.200000e+01 : f32
    %3 = vector.broadcast %cst_1 : f32 to vector<16x1xf32>
    %4 = arith.divf %2, %3 : vector<16x1xf32>
    %5 = vector.broadcast %4 : vector<16x1xf32> to vector<16x32xf32>
    %6 = arith.subf %0, %5 : vector<16x32xf32>
    %7 = arith.mulf %6, %6 : vector<16x32xf32>
    %cst_2 = arith.constant dense<0.000000e+00> : vector<16xf32>
    %8 = vector.multi_reduction <add>, %7, %cst_2 [1] : vector<16x32xf32> to vector<16xf32>
    %9 = vector.shape_cast %8 : vector<16xf32> to vector<16x1xf32>
    %cst_3 = arith.constant 3.200000e+01 : f32
    %10 = vector.broadcast %cst_3 : f32 to vector<16x1xf32>
    %11 = arith.divf %9, %10 : vector<16x1xf32>
    %cst_4 = arith.constant 9.99999974E-6 : f32
    %12 = vector.broadcast %cst_4 : f32 to vector<16x1xf32>
    %13 = arith.addf %11, %12 : vector<16x1xf32>
    %14 = math.rsqrt %13 : vector<16x1xf32>
    %15 = vector.broadcast %14 : vector<16x1xf32> to vector<16x32xf32>
    %16 = arith.mulf %6, %15 : vector<16x32xf32>
    %17 = arith.truncf %16 : vector<16x32xf32> to vector<16x32xbf16>
    %c0_5 = arith.constant 0 : index
    %c0_6 = arith.constant 0 : index
    %18 = vector.load %arg2[%c0_5, %c0_6] : memref<32x32xbf16, #tpu.memory_space<vmem>>, vector<32x32xbf16>
    %cst_7 = arith.constant dense<0.000000e+00> : vector<16x32xf32>
    %19 = tpu.matmul %17, %18, %cst_7 {dimension_numbers = #tpu.dot_dimension_numbers<[1], [0], [0], [1], [0, 0, 1, 1], [], []>} : vector<16x32xbf16>, vector<32x32xbf16>, vector<16x32xf32> -> vector<16x32xf32>
    %c0_8 = arith.constant 0 : index
    %c0_9 = arith.constant 0 : index
    %20 = vector.load %arg3[%c0_8, %c0_9] : memref<1x32xf32, #tpu.memory_space<vmem>>, vector<1x32xf32>
    %21 = vector.broadcast %20 : vector<1x32xf32> to vector<16x32xf32>
    %22 = arith.addf %19, %21 : vector<16x32xf32>
    %c0_10 = arith.constant 0 : index
    %c0_11 = arith.constant 0 : index
    %23 = vector.load %arg4[%c0_10, %c0_11] : memref<16x32xf32, #tpu.memory_space<vmem>>, vector<16x32xf32>
    tpu.vector_store %arg4[%c0_10, %c0_11], %22 {strides = array<i32>} : memref<16x32xf32, #tpu.memory_space<vmem>>, vector<16x32xf32>,
    return
  }
  func.func @transform_0(%arg0: i32) -> (i32, i32) {
    %c0_i32 = arith.constant 0 : i32
    %c0_i32_0 = arith.constant 0 : i32
    return %arg0, %c0_i32 : i32, i32
  }
  func.func @transform_1(%arg0: i32) -> (i32, i32) {
    %c0_i32 = arith.constant 0 : i32
    %c0_i32_0 = arith.constant 0 : i32
    %c0_i32_1 = arith.constant 0 : i32
    return %c0_i32, %c0_i32_0 : i32, i32
  }
  func.func @transform_2(%arg0: i32) -> (i32, i32) {
    %c0_i32 = arith.constant 0 : i32
    %c0_i32_0 = arith.constant 0 : i32
    %c0_i32_1 = arith.constant 0 : i32
    return %c0_i32, %c0_i32_0 : i32, i32
  }
  func.func @transform_3(%arg0: i32) -> (i32, i32) {
    %c0_i32 = arith.constant 0 : i32
    %c0_i32_0 = arith.constant 0 : i32
    return %arg0, %c0_i32 : i32, i32
  }
}

</mosaic_0001>

<bundles_post_ra>
// kernel: prenorm_linear.1
= control target key start
LH: loop header
LB: loop body
LE: loop exit
PB: predicated region body
PF: predicated region fallthrough
CT: control target
= control target key end

     0   :  { %vm18_vm0 = vcmask 261120   ;;  %s225_s0 = inlined_call_operand.vmem [shape: f32[16,32], index: 0, kind: input, shape index: {}]   ;;  %s226_s1 = inlined_call_operand.vmem [shape: bf16[32,32], index: 1, kind: input, shape index: {}]   ;;  %s227_s2 = inlined_call_operand.vmem [shape: f32[1,32], index: 2, kind: input, shape index: {}]   ;;  %s228_s3 = inlined_call_operand.hbm [shape: f32[16,32], index: 3, kind: output, shape index: {}]  }
   0x1   :  { %v16_v0 = vld [vmem:[%s225_s0] sm:$0xff] }
   0x2   :  { %v19_v1 = vsel %vm18_vm0, %v16_v0, 0.0 }
   0x3   :  { %8 = vsyncpa [#allocation3], 0  ;;  %20 = vadd.xlane.f32.xlu0 %v19_v1  ;;  %v17_v2 = vld [vmem:[%s225_s0 + $0x8] sm:$0xff]  ;;  %v176_v4 = vmov 32.0   ;;  %v137_v22 = vld [vmem:[%s226_s1] sm:$0xff]  ;;  %s177_s20 = smov [#allocation2]  }
   0x4   :  { %v22_v3 = vsel %vm18_vm0, %v17_v2, 0.0  ;;  %144 = vrcp.f32 %v176_v4  ;;  %v138_v21 = vld [vmem:[%s226_s1 + $0x8] sm:$0xff]  ;;  %v143_v46 = vld [vmem:[%s227_s2] ss:$0 sm:$0xff]  ;;  %s114_s21 = sshll.u32 %s177_s20, 4  ;;  %s116_s24 = sshll.u32 %s228_s3, 4  ;;  %s115_s21 = int_to_ptr.vmem [resolvable:$true] %s114_s21  ;;  %s117_s24 = int_to_ptr.hbm [resolvable:$true] %s116_s24 }
   0x5   :  { %100 = vmatpush.bf16.msra.mxu0 %v138_v21  ;;  %s178_s25 = smov 128   ;;  %s179_s26 = smov 8  }
   0x9   :  { %101 = vmatpush.bf16.msra.mxu0 %v137_v22 }
   0xa   :  { %v145_v5 = vpop.eup %144 }
   0xb   :  { %23 = vadd.xlane.f32.xlu0 %v22_v3  ;;  %v26_v6 = vmul.f32 32.0, %v145_v5  ;;  %vm30_vm1 = vweird.f32 %v145_v5 }
   0xd   :  { %v27_v7 = vsub.f32 1.0, %v26_v6 }
   0xf   :  { %v28_v8 = vmul.f32 %v145_v5, %v27_v7 }
  0x11   :  { %v29_v9 = vadd.f32 %v145_v5, %v28_v8 }
  0x13   :  { %v31_v10 = vsel %vm30_vm1, %v145_v5, %v29_v9 }
  0x76   :  { %v21_v11 = vpop.xlane.xlu0 %20 }
  0x77   :  { %v32_v12 = vmul.f32 %v31_v10, %v21_v11 }
  0x79   :  { %v34_v13 = vsub.f32 %v16_v0, %v32_v12 }
  0x7b   :  { %v36_v14 = vmul.f32 %v34_v13, %v34_v13 }
  0x7d   :  { %v38_v15 = vsel %vm18_vm0, %v36_v14, 0.0 }
  0x7e   :  { %39 = vadd.xlane.f32.xlu1 %v38_v15  ;;  %v24_v16 = vpop.xlane.xlu0 %23 }
  0x7f   :  { %v33_v17 = vmul.f32 %v31_v10, %v24_v16 }
  0x81   :  { %v35_v18 = vsub.f32 %v17_v2, %v33_v17 }
  0x83   :  { %v37_v19 = vmul.f32 %v35_v18, %v35_v18 }
  0x85   :  { %v41_v20 = vsel %vm18_vm0, %v37_v19, 0.0 }
  0x86   :  { %42 = vadd.xlane.f32.xlu1 %v41_v20 }
  0xf1   :  { %v40_v23 = vpop.xlane.xlu1 %39 }
  0xf2   :  { %v44_v24 = vmul.f32 %v40_v23, %v31_v10 }
  0xf4   :  { %v46_v25 = vadd.f32 1e-05, %v44_v24 }
  0xf6   :  { %146 = vrsqrt.f32 %v46_v25  ;;  %vm54_vm3 = vweird.f32 %v46_v25 }
  0xf9   :  { %v43_v26 = vpop.xlane.xlu1 %42 }
  0xfa   :  { %v45_v27 = vmul.f32 %v43_v26, %v31_v10 }
  0xfc   :  { %v147_v28 = vpop.eup %146  ;;  %v47_v29 = vadd.f32 1e-05, %v45_v27 }
  0xfd   :  { %v49_v30 = vmul.f32 %v147_v28, %v46_v25  ;;  %vm55_vm2 = vweird.f32 %v147_v28 }
  0xfe   :  { %148 = vrsqrt.f32 %v47_v29  ;;  %vm56_vm5 = vmor %vm54_vm3, %vm55_vm2  ;;  %vm64_vm6 = vweird.f32 %v47_v29 }
  0xff   :  { %v50_v31 = vmul.f32 %v147_v28, %v49_v30 }
 0x101   :  { %v51_v32 = vmul.f32 0.5, %v50_v31 }
 0x103   :  { %v52_v34 = vsub.f32 1.5, %v51_v32 }
 0x104   :  { %v149_v33 = vpop.eup %148 }
 0x105   :  { %v59_v35 = vmul.f32 %v149_v33, %v47_v29  ;;  %v53_v37 = vmul.f32 %v147_v28, %v52_v34  ;;  %vm65_vm4 = vweird.f32 %v149_v33 }
 0x106   :  { %vm66_vm7 = vmor %vm64_vm6, %vm65_vm4 }
 0x107   :  { %v60_v36 = vmul.f32 %v149_v33, %v59_v35  ;;  %v57_v41 = vsel %vm56_vm5, %v147_v28, %v53_v37 }
 0x108   :  { %v68_v43 = vmul.f32 %v57_v41, %v34_v13 }
 0x109   :  { %v61_v38 = vmul.f32 0.5, %v60_v36 }
 0x10b   :  { %v62_v39 = vsub.f32 1.5, %v61_v38 }
 0x10d   :  { %v63_v40 = vmul.f32 %v149_v33, %v62_v39 }
 0x10f   :  { %v67_v42 = vsel %vm66_vm7, %v149_v33, %v63_v40 }
 0x110   :  { %v69_v44 = vmul.f32 %v67_v42, %v35_v18 }
 0x112   :  { %v70_v45 = vpack.c.bf16 %v69_v44, %v68_v43 }
 0x114   :  { %136 = vmatmul.msk.bf16.vlgmr.msra.gmra.mxu0 %vm18_vm0, %v70_v45 }
 0x191   :  { %v103_v47 = vpop.f32.mrf.mxu0 }
 0x192   :  { %v104_v48 = vadd.f32 %v143_v46, %v103_v47 }
 0x194   :  { %108 = vst.msk [vmem:[#allocation2] sm:$0xff] %vm18_vm0, %v104_v48 }
 0x199   :  { %v105_v49 = vpop.f32.mrf.mxu0 }
 0x19a   :  { %v106_v50 = vadd.f32 %v143_v46, %v105_v49 }
 0x19c   :  { %109 = vst.msk [vmem:[#allocation2 + $0x8] sm:$0xff] %vm18_vm0, %v106_v50 }
 0x19d   :  { %122 = dma.vmem_to_hbm [thread:$0]  %s115_s21, 256, %s117_s24, [#allocation3], %s178_s25, %s178_s25, %s179_s26  }
 0x19e   :  { %174 = dma.done.wait [#allocation3], 256  }
 0x19f   :  { %175 = vsyncadd [#allocation3], 4294967040 }
 0x1a0   :  { %127 = vsyncpa [#allocation3], 1 }

</bundles_post_ra>
